<compile_context>
chip_gen: v6e
topology: v6e:2x2x1
jax: 0.10.0
libtpu: 0.0.40
codegen_flags: <defaults>
</compile_context>

<pallas_src>
import functools

import jax
import jax.numpy as jnp
from jax.experimental import pallas as pl
from jax.experimental.pallas import tpu as pltpu

EPS = 1e-6
NEG_SLOPE = 0.2


def _round_up(v, m):
    return -(-v // m) * m


# ------------------------------- kernel --------------------------------------
def _vn_linear_leaky_relu_kernel(x_ref, w_ref, g_ref, e_ref, o_ref, *,
                                 cout3, p_half, ns):
    # x_ref: (1, 3*Cin, TN)      merged, sublane/lane dense
    # w_ref: (2*P, 3*Cin) f32    rows [0:3*Cout]=feat, [P:P+3*Cout]=dir (kron I3)
    # g_ref: (Cq, P)      f32    0/1 group-sum matrix (dot/dsq over 3 components)
    # e_ref: (P, Cq)      f32    0/1 broadcast matrix (coef back to 3 components)
    # o_ref: (1, 3*Cout, TN)
    x = x_ref[0].astype(jnp.float32)                                   # (3*Cin, TN)

    # One MXU matmul produces p and d already in merged row order (r = 3*co + a).
    pd = jnp.dot(w_ref[...], x, preferred_element_type=jnp.float32)   # (2*P, TN)
    p = pd[:p_half]                                                    # (P, TN)
    d = pd[p_half:]                                                    # (P, TN)

    # Per-output-channel reductions over the 3 vector components: tiny exact
    # 0/1 matmuls -> no sublane reshapes / relayouts.
    g = g_ref[...]
    dot = jnp.dot(g, p * d, preferred_element_type=jnp.float32)       # (Cq, TN)
    dsq = jnp.dot(g, d * d, preferred_element_type=jnp.float32)       # (Cq, TN)

    # Blend coefficient (shared across the 3 components); EUP reciprocal + one
    # Newton step recovers ~f32 accuracy at effectively zero cost.
    y = dsq + EPS
    r = pl.reciprocal(y, approx=True)
    r = r * (2.0 - y * r)
    s = jnp.where(dot < 0.0, (1.0 - ns) * dot * r, 0.0)               # (Cq, TN)
    s3 = jnp.dot(e_ref[...], s, preferred_element_type=jnp.float32)   # (P, TN)

    out = p - s3 * d                                                   # (P, TN)
    if cout3 != p_half:
        out = out[:cout3]
    o_ref[0] = out.astype(o_ref.dtype)                                 # one dense store


# ------------------------------- wrapper --------------------------------------
def _vmem_block_bytes(tn, cin3, cout3, p_half, cq, io_itemsize):
    x_blk = _round_up(cin3, 8) * tn * io_itemsize
    o_blk = _round_up(cout3, 8) * tn * io_itemsize
    w_blk = (2 * p_half) * _round_up(cin3, 128) * 4
    g_blk = _round_up(cq, 8) * _round_up(p_half, 128) * 4
    e_blk = _round_up(p_half, 8) * _round_up(cq, 128) * 4
    # f32 in-kernel intermediates: pd, p*d, d*d, dot/dsq/s/r, s3, out
    interm = (6 * p_half + 4 * _round_up(cq, 8)) * tn * 4
    # x/o double-buffered by the pipeline; weight-like inputs counted 2x (safe).
    return 2 * (x_blk + o_blk) + 2 * (w_blk + g_blk + e_blk) + interm


def _vmem_capacity_bytes():
    try:
        info = pltpu.get_tpu_info()
        cap = getattr(info, "vmem_capacity_bytes", None)
        if cap:
            return int(cap)
    except Exception:
        pass
    return 64 * 1024 * 1024          # v7x worst case


def _pick_tile_n(n, b, fits):
    cands = [t for t in (2048, 1024, 512, 256, 128) if fits(t)]
    if not cands:
        cands = [128]
    tn_max = cands[0]
    tn = None
    for t in cands:                  # biggest exact divisor -> no padding
        if n % t == 0:
            tn = t
            break
    if tn is None:                   # pad N instead of an unchecked tn = N fallback
        tn = min(tn_max, 512, _round_up(n, 128))
    n_pad = _round_up(n, tn)
    # Keep >= 2 parallel blocks so both v7x TensorCores get work.
    while b * (n_pad // tn) < 2 and tn > 128 and tn % 256 == 0:
        tn //= 2
    return tn, n_pad


def vn_linear_leaky_relu(x, w_feat, w_dir, negative_slope=NEG_SLOPE):
    """x: [B, Cin, 3, N]. w_feat/w_dir: [Cout, Cin]. Returns [B, Cout, 3, N] in x.dtype."""
    B, Cin, three, N = x.shape
    assert three == 3
    Cout, Cin_w = w_feat.shape
    assert Cin_w == Cin and w_dir.shape == (Cout, Cin)

    cin3, cout3 = 3 * Cin, 3 * Cout
    p_half = _round_up(cout3, 8)          # sublane-aligned start of the dir half
    cq = _round_up(Cout, 8)

    # --- weights: stacked block-diagonal matrix, built once (tiny) -----------
    eye3 = jnp.eye(3, dtype=jnp.float32)
    w_big = jnp.zeros((2 * p_half, cin3), jnp.float32)
    w_big = w_big.at[:cout3].set(jnp.kron(w_feat.astype(jnp.float32), eye3))
    w_big = w_big.at[p_half:p_half + cout3].set(jnp.kron(w_dir.astype(jnp.float32), eye3))

    # 0/1 group-sum (Cq, P) and broadcast (P, Cq) matrices.
    row = jnp.arange(cq)[:, None]
    col = jnp.arange(p_half)[None, :]
    g = ((col // 3 == row) & (col < cout3) & (row < Cout)).astype(jnp.float32)
    e = g.T

    # --- tile selection / VMEM budget -----------------------------------------
    io_itemsize = jnp.dtype(x.dtype).itemsize
    cap = _vmem_capacity_bytes()
    budget = int(0.70 * cap)

    def fits(t):
        return _vmem_block_bytes(t, cin3, cout3, p_half, cq, io_itemsize) <= budget

    tn, n_pad = _pick_tile_n(N, B, fits)
    need = _vmem_block_bytes(tn, cin3, cout3, p_half, cq, io_itemsize)
    vmem_limit = int(min(max(need + (4 << 20), 24 << 20), int(0.75 * cap)))

    # --- merged (free reshape) and, only if needed, padded views --------------
    x_m = x.reshape(B, cin3, N)
    if n_pad != N:
        x_m = jnp.pad(x_m, ((0, 0), (0, 0), (0, n_pad - N)))

    grid = (B, n_pad // tn)

    kernel = functools.partial(_vn_linear_leaky_relu_kernel,
                               cout3=cout3, p_half=p_half,
                               ns=float(negative_slope))

    flops = int(2 * B * n_pad * (2 * p_half) * cin3
                + 2 * B * n_pad * (2 * cq * p_half + p_half * cq))
    bytes_accessed = int(x_m.size * io_itemsize + B * cout3 * n_pad * io_itemsize
                         + (w_big.size + g.size + e.size) * 4)
    cost = pl.CostEstimate(flops=flops,
                           transcendentals=int(B * cq * n_pad),
                           bytes_accessed=bytes_accessed)

    out_m = pl.pallas_call(
        kernel,
        out_shape=jax.ShapeDtypeStruct((B, cout3, n_pad), x.dtype),
        grid_spec=pltpu.PrefetchScalarGridSpec(
            num_scalar_prefetch=0,
            grid=grid,
            in_specs=[
                pl.BlockSpec((1, cin3, tn), lambda b, n: (b, 0, n)),
                pl.BlockSpec((2 * p_half, cin3), lambda b, n: (0, 0)),
                pl.BlockSpec((cq, p_half), lambda b, n: (0, 0)),
                pl.BlockSpec((p_half, cq), lambda b, n: (0, 0)),
            ],
            out_specs=pl.BlockSpec((1, cout3, tn), lambda b, n: (b, 0, n)),
        ),
        compiler_params=pltpu.CompilerParams(
            dimension_semantics=("parallel", "parallel"),
            vmem_limit_bytes=vmem_limit,
        ),
        cost_estimate=cost,
    )(x_m, w_big, g, e)

    if n_pad != N:
        out_m = out_m[:, :, :N]
    return out_m.reshape(B, Cout, 3, N)


# ----------------------- pure-JAX reference (for checking) --------------------
def vn_linear_leaky_relu_ref(x, w_feat, w_dir, ns=NEG_SLOPE):
    p = jnp.einsum('oc,bcan->boan', w_feat, x, precision='highest')
    d = jnp.einsum('oc,bcan->boan', w_dir, x, precision='highest')
    dot = (p * d).sum(2, keepdims=True)
    mask = (dot >= 0).astype(x.dtype)
    dsq = (d * d).sum(2, keepdims=True)
    return ns * p + (1 - ns) * (mask * p + (1 - mask) * (p - dot / (dsq + EPS) * d))


if __name__ == "__main__":
    key = jax.random.PRNGKey(0)
    ks = jax.random.split(key, 6)

    # Primary config: aligned N (tiled 2-D parallel grid), f32 I/O.
    B, Cin, Cout, N = 2, 8, 16, 512
    x = jax.random.normal(ks[0], (B, Cin, 3, N), jnp.float32)
    bound = 1.0 / (Cin ** 0.5)                       # nn.Linear default init
    w_feat = jax.random.uniform(ks[1], (Cout, Cin), jnp.float32, -bound, bound)
    w_dir = jax.random.uniform(ks[2], (Cout, Cin), jnp.float32, -bound, bound)

    out = vn_linear_leaky_relu(x, w_feat, w_dir)
    jax.block_until_ready(out)
    ref = vn_linear_leaky_relu_ref(x, w_feat, w_dir)
    assert out.shape == ref.shape
    err = float(jnp.max(jnp.abs(out - ref)))
    assert jnp.allclose(out, ref, atol=1e-3, rtol=1e-3), err

    # Secondary config: indivisible N + non-8-aligned channels (exercises the
    # padded-N path and the padded weight/output rows that the old fallback skipped).
    B2, Cin2, Cout2, N2 = 1, 6, 10, 200
    x2 = jax.random.normal(ks[3], (B2, Cin2, 3, N2), jnp.float32)
    b2 = 1.0 / (Cin2 ** 0.5)
    wf2 = jax.random.uniform(ks[4], (Cout2, Cin2), jnp.float32, -b2, b2)
    wd2 = jax.random.uniform(ks[5], (Cout2, Cin2), jnp.float32, -b2, b2)
    out2 = vn_linear_leaky_relu(x2, wf2, wd2)
    jax.block_until_ready(out2)
    ref2 = vn_linear_leaky_relu_ref(x2, wf2, wd2)
    err2 = float(jnp.max(jnp.abs(out2 - ref2)))
    assert jnp.allclose(out2, ref2, atol=1e-3, rtol=1e-3), err2

    print("KERNEL_OK")
</pallas_src>

<mosaic_0001>
module attributes {stable_mosaic.version = 11 : i64} {
  func.func @_vn_linear_leaky_relu_kernel(%arg0: i32, %arg1: i32, %arg2: memref<1x24x512xf32, #tpu.memory_space<vmem>>, %arg3: memref<96x24xf32, #tpu.memory_space<vmem>>, %arg4: memref<16x48xf32, #tpu.memory_space<vmem>>, %arg5: memref<48x16xf32, #tpu.memory_space<vmem>>, %arg6: memref<1x48x512xf32, #tpu.memory_space<vmem>>) attributes {dimension_semantics = [#tpu.dimension_semantics<parallel>, #tpu.dimension_semantics<parallel>], iteration_bounds = array<i64: 2, 1>, scalar_prefetch = 0 : i64, scratch_operands = 0 : i64, tpu.core_type = #tpu.core_type<tc>, window_params = [{transform_indices = @transform_0, window_bounds = array<i64: 1, 24, 512>}, {pipeline_mode = #tpu.pipeline_mode<synchronous>, transform_indices = @transform_1, window_bounds = array<i64: 96, 24>}, {pipeline_mode = #tpu.pipeline_mode<synchronous>, transform_indices = @transform_2, window_bounds = array<i64: 16, 48>}, {pipeline_mode = #tpu.pipeline_mode<synchronous>, transform_indices = @transform_3, window_bounds = array<i64: 48, 16>}, {transform_indices = @transform_4, window_bounds = array<i64: 1, 48, 512>}]} {
    %c0 = arith.constant 0 : index
    %c0_0 = arith.constant 0 : index
    %c0_1 = arith.constant 0 : index
    %0 = vector.load %arg2[%c0, %c0_0, %c0_1] : memref<1x24x512xf32, #tpu.memory_space<vmem>>, vector<1x24x512xf32>
    %1 = vector.shape_cast %0 : vector<1x24x512xf32> to vector<24x512xf32>
    %c0_2 = arith.constant 0 : index
    %c0_3 = arith.constant 0 : index
    %2 = vector.load %arg3[%c0_2, %c0_3] : memref<96x24xf32, #tpu.memory_space<vmem>>, vector<96x24xf32>
    %cst = arith.constant dense<0.000000e+00> : vector<96x512xf32>
    %3 = tpu.matmul %2, %1, %cst {dimension_numbers = #tpu.dot_dimension_numbers<[1], [0], [0], [1], [0, 0, 1, 1], [], []>} : vector<96x24xf32>, vector<24x512xf32>, vector<96x512xf32> -> vector<96x512xf32>
    %4 = vector.extract_strided_slice %3 {offsets = [0, 0], sizes = [48, 512], strides = [1, 1]} : vector<96x512xf32> to vector<48x512xf32>
    %5 = vector.extract_strided_slice %3 {offsets = [48, 0], sizes = [48, 512], strides = [1, 1]} : vector<96x512xf32> to vector<48x512xf32>
    %c0_4 = arith.constant 0 : index
    %c0_5 = arith.constant 0 : index
    %6 = vector.load %arg4[%c0_4, %c0_5] : memref<16x48xf32, #tpu.memory_space<vmem>>, vector<16x48xf32>
    %7 = arith.mulf %4, %5 : vector<48x512xf32>
    %cst_6 = arith.constant dense<0.000000e+00> : vector<16x512xf32>
    %8 = tpu.matmul %6, %7, %cst_6 {dimension_numbers = #tpu.dot_dimension_numbers<[1], [0], [0], [1], [0, 0, 1, 1], [], []>} : vector<16x48xf32>, vector<48x512xf32>, vector<16x512xf32> -> vector<16x512xf32>
    %9 = arith.mulf %5, %5 : vector<48x512xf32>
    %cst_7 = arith.constant dense<0.000000e+00> : vector<16x512xf32>
    %10 = tpu.matmul %6, %9, %cst_7 {dimension_numbers = #tpu.dot_dimension_numbers<[1], [0], [0], [1], [0, 0, 1, 1], [], []>} : vector<16x48xf32>, vector<48x512xf32>, vector<16x512xf32> -> vector<16x512xf32>
    %cst_8 = arith.constant 9.99999997E-7 : f32
    %11 = vector.broadcast %cst_8 : f32 to vector<16x512xf32>
    %12 = arith.addf %10, %11 : vector<16x512xf32>
    %13 = tpu.reciprocal %12 {approx = true} : vector<16x512xf32> -> vector<16x512xf32>
    %14 = arith.mulf %12, %13 : vector<16x512xf32>
    %cst_9 = arith.constant 2.000000e+00 : f32
    %15 = vector.broadcast %cst_9 : f32 to vector<16x512xf32>
    %16 = arith.subf %15, %14 : vector<16x512xf32>
    %17 = arith.mulf %13, %16 : vector<16x512xf32>
    %cst_10 = arith.constant 0.000000e+00 : f32
    %18 = vector.broadcast %cst_10 : f32 to vector<16x512xf32>
    %19 = arith.cmpf olt, %8, %18 : vector<16x512xf32>
    %cst_11 = arith.constant 8.000000e-01 : f32
    %20 = vector.broadcast %cst_11 : f32 to vector<16x512xf32>
    %21 = arith.mulf %20, %8 : vector<16x512xf32>
    %22 = arith.mulf %21, %17 : vector<16x512xf32>
    %cst_12 = arith.constant 0.000000e+00 : f32
    %23 = vector.broadcast %cst_12 : f32 to vector<16x512xf32>
    %24 = arith.select %19, %22, %23 : vector<16x512xi1>, vector<16x512xf32>
    %c0_13 = arith.constant 0 : index
    %c0_14 = arith.constant 0 : index
    %25 = vector.load %arg5[%c0_13, %c0_14] : memref<48x16xf32, #tpu.memory_space<vmem>>, vector<48x16xf32>
    %cst_15 = arith.constant dense<0.000000e+00> : vector<48x512xf32>
    %26 = tpu.matmul %25, %24, %cst_15 {dimension_numbers = #tpu.dot_dimension_numbers<[1], [0], [0], [1], [0, 0, 1, 1], [], []>} : vector<48x16xf32>, vector<16x512xf32>, vector<48x512xf32> -> vector<48x512xf32>
    %27 = arith.mulf %26, %5 : vector<48x512xf32>
    %28 = arith.subf %4, %27 : vector<48x512xf32>
    %c0_16 = arith.constant 0 : index
    %c0_17 = arith.constant 0 : index
    %c0_18 = arith.constant 0 : index
    %29 = vector.load %arg6[%c0_16, %c0_17, %c0_18] : memref<1x48x512xf32, #tpu.memory_space<vmem>>, vector<1x48x512xf32>
    %30 = vector.shape_cast %29 : vector<1x48x512xf32> to vector<48x512xf32>
    %31 = vector.shape_cast %28 : vector<48x512xf32> to vector<1x48x512xf32>
    tpu.vector_store %arg6[%c0_16, %c0_17, %c0_18], %31 {strides = array<i32>} : memref<1x48x512xf32, #tpu.memory_space<vmem>>, vector<1x48x512xf32>,
    return
  }
  func.func @transform_0(%arg0: i32, %arg1: i32) -> (i32, i32, i32) {
    %c0_i32 = arith.constant 0 : i32
    %c0_i32_0 = arith.constant 0 : i32
    return %arg0, %c0_i32, %arg1 : i32, i32, i32
  }
  func.func @transform_1(%arg0: i32, %arg1: i32) -> (i32, i32) {
    %c0_i32 = arith.constant 0 : i32
    %c0_i32_0 = arith.constant 0 : i32
    %c0_i32_1 = arith.constant 0 : i32
    return %c0_i32, %c0_i32_0 : i32, i32
  }
  func.func @transform_2(%arg0: i32, %arg1: i32) -> (i32, i32) {
    %c0_i32 = arith.constant 0 : i32
    %c0_i32_0 = arith.constant 0 : i32
    %c0_i32_1 = arith.constant 0 : i32
    return %c0_i32, %c0_i32_0 : i32, i32
  }
  func.func @transform_3(%arg0: i32, %arg1: i32) -> (i32, i32) {
    %c0_i32 = arith.constant 0 : i32
    %c0_i32_0 = arith.constant 0 : i32
    %c0_i32_1 = arith.constant 0 : i32
    return %c0_i32, %c0_i32_0 : i32, i32
  }
  func.func @transform_4(%arg0: i32, %arg1: i32) -> (i32, i32, i32) {
    %c0_i32 = arith.constant 0 : i32
    %c0_i32_0 = arith.constant 0 : i32
    return %arg0, %c0_i32, %arg1 : i32, i32, i32
  }
}

</mosaic_0001>

<bundles_post_ra>
// kernel: tpu_custom_call.1
= control target key start
LH: loop header
LB: loop body
LE: loop exit
PB: predicated region body
PF: predicated region fallthrough
CT: control target
= control target key end

     0   :  { %9 = vsyncpa [#allocation3], 0  ;;  %s2287_s0 = inlined_call_operand.hbm [shape: f32[2,24,512], index: 0, kind: input, shape index: {}]   ;;  %s2288_s1 = inlined_call_operand.vmem [shape: f32[96,24], index: 1, kind: input, shape index: {}]   ;;  %s2289_s2 = inlined_call_operand.vmem [shape: f32[16,48], index: 2, kind: input, shape index: {}]   ;;  %s2290_s3 = inlined_call_operand.vmem [shape: f32[48,16], index: 3, kind: input, shape index: {}]   ;;  %s2291_s4 = inlined_call_operand.hbm [shape: f32[2,48,512], index: 4, kind: output, shape index: {}]  }
   0x1   :  { %11 = vsyncpa [#allocation3 + $0x1], 0 }
   0x2   :  { %12 = vsyncpa [#allocation4], 0 }
   0x3   :  { %14 = vsyncpa [#allocation4 + $0x1], 0  ;;  %s1693_s15 = smov 0   ;;  %s1695_s16 = smov 0  }
   0x4   :  { %s1697_s17 = smov 0   ;;  %s1699_s18 = smov 0  }
   0x5   :  { %s1701_s19 = smov 0   ;;  %s1703_s20 = smov 0  }
   0x6 LB: > { %s1402_s21 = sadd.s32 4294967295, %s1659_s20   ;;  %s1403_s22 = sadd.s32 4294967294, %s1659_s20   ;;  %s1659_s20 = sphi %s1703_s20, %s20_s20   ;;  %s1655_s19 = sphi %s1701_s19, %s2383_s19   ;;  %s1651_s18 = sphi %s1699_s18, %s2382_s18   ;;  %s1647_s17 = sphi %s1697_s17, %s2381_s17   ;;  %s1643_s16 = sphi %s1695_s16, %s2380_s16   ;;  %s1639_s15 = sphi %s1693_s15, %s2379_s15  }
   0x7   : > { %s32_s23 = sadd.s32 1, %s1655_s19  ;;  %s41_s24 = sadd.s32 1, %s1647_s17 }
   0x8   : > { %p34_p0 = scmp.ge.s32.totalorder %s32_s23, 2  ;;  %p48_p1 = scmp.ne.s32.totalorder %s1647_s17, %s1643_s16 }
   0x9   : > { %p49_p2 = scmp.eq.s32.totalorder %s1659_s20, 0  ;;  %p54_p3 = scmp.ne.s32.totalorder %s1643_s16, %s1639_s15 }
   0xa   : > { %s2385_s23 = smov (%p34_p0, %s32_s23), 0  ;;  %p55_p5 = scmp.eq.s32.totalorder %s1402_s21, 0 }
   0xb   : > { %p1734_p4 = por %p49_p2, %p48_p1  ;;  %s36_s26 = ssub.s32 %s1655_s19, %s2385_s23 }
   0xc   : > { %p143_p6 = scmp.eq.s32.totalorder %s1402_s21, 1  ;;  %p39_p7 = scmp.eq.s32.totalorder %s36_s26, 0 }
   0xd   : > { %p1740_p8 = por %p55_p5, %p54_p3  ;;  %p149_p10 = scmp.eq.s32.totalorder %s1403_s22, 1 }
   0xe   : > { %p1744_p9 = por %p143_p6, %p48_p1  ;;  %p1480_p13 = scmp.lt.s32.totalorder %s1659_s20, 2 }
   0xf   : > { %s1749_s29 = scalar_select %p39_p7, %s1647_s17, %s41_s24  }
  0x10   : > { %p1751_p11 = por %p149_p10, %p54_p3  ;;  %s178_s5 = sand.u32 1, %s1647_s17  }
  0x11   : > { %s1463_s6 = smul.u32 96, %s178_s5  ;;  %p1761_p0 = pnand %p1480_p13, %p1734_p4 }
  0x12   : > { %s1464_s7 = smul.u32 1536, %s1655_s19  ;;  %p1407_p1 = scmp.ge.s32.totalorder %s1659_s20, 1 }
  0x13   : > { %s182_s12 = scalar_lea.vmem [#allocation2], %s1463_s6  ;;  %s179_s14 = scalar_lea.sflag [#allocation3], %s178_s5 }
  0x14   : > { %s190_s11 = scalar_lea.hbm %s2287_s0, %s1464_s7  ;;  %s191_s13 = sshll.u32 %s182_s12, 4  ;;  %s192_s13 = int_to_ptr.vmem [resolvable:$true] %s191_s13 }
  0x15   : > { %p1553_p2 = pneg %p1761_p0  ;;  %s1564_s21 = scalar_lea.vmem %s192_s13, 1536 }
  0x16   : > { %p1565_p3 = scmp.ne.s32.totalorder %s192_s13, %s1564_s21  ;;  %s1661_s22 = smov [#allocation2]  }
  0x17   : > { %s1569_s24 = sshll.u32 %s1661_s22, 4  ;;  %s1570_s24 = int_to_ptr.vmem [resolvable:$false] %s1569_s24 }
  0x18   : > { %p1567_p5 = pnand %p1565_p3, %p1553_p2  ;;  %s1571_s25 = scalar_lea.vmem %s1570_s24, 3072 }
  0x19   : > { %p1572_p4 = scmp.lt.s32.totalorder %s192_s13, %s1570_s24  ;;  %p1573_p7 = scmp.lt.s32.totalorder %s1571_s25, %s1564_s21 }
  0x1a   : > { %p1568_p6 = pneg %p1567_p5 }
  0x1b   : > { %p1574_p10 = por %p1573_p7, %p1572_p4 }
  0x1d   : > { %p1575_p13 = pnand %p1574_p10, %p1568_p6 }
  0x1f   : > { %1578 = shalt.err (!%p1575_p13)
}
  0x20   : > { %s1662_s26 = smov 512   ;;  %s1663_s5 = smov 32  }
  0x21   : > { %1475 = dma.hbm_to_vmem [thread:$0]  (!%p1761_p0), %s190_s11, 1536, %s192_s13, %s179_s14, %s1662_s26, %s1662_s26, %s1663_s5  }
  0x22   : > { %p199_p12 = scmp.lt.s32.totalorder %s1659_s20, 3 }
  0x24   : > { %p200_p2 = pnand %p1407_p1, %p199_p12 }
  0x26   : > { %203 = sbr.rel (%p200_p2) target bundleno = 786 (0x312), region = 36 }
  0x2b   : > { %s1777_s6 = sand.u32 1, %s1643_s16  }
  0x2c   : > { %s1465_s7 = smul.u32 96, %s1777_s6  ;;  %s206_s9 = scalar_lea.sflag [#allocation3], %s1777_s6 }
  0x2e   : > { %s209_s10 = scalar_lea.vmem [#allocation2], %s1465_s7 }
  0x2f   : > { %1630 = dma.done.wait (%p1740_p8), %s206_s9, 1536  }
  0x30   : > { %1632 = vsyncadd (%p1740_p8), %s206_s9, 4294965760  ;;  %v2292_v0 = vmov 0.0   ;;  %v245_v1 = vld [vmem:[%s209_s10 + $0x48] sm:$0xff]  ;;  %v247_v2 = vld [vmem:[%s209_s10 + $0x58] sm:$0xff]  ;;  %vm260_vm0 = vcmask 195584   ;;  %vm597_vm1 = vcmask 392192  }
  0x31   : > { %361 = vmatprep.mubr.f32.mxu0 %v2292_v0  ;;  %498 = vmatprep.mubr.f32.mxu1 %v2292_v0  ;;  %v244_v3 = vld [vmem:[%s209_s10 + $0x40] sm:$0xff]  ;;  %v246_v4 = vld [vmem:[%s209_s10 + $0x50] sm:$0xff]  ;;  %v241_v5 = vld [vmem:[%s209_s10 + $0x28] sm:$0xff]  ;;  %vm1006_vm2 = vcmask 130048   ;;  %s1466_s26 = smul.u32 192, %s1777_s6  ;;  %s1300_s8 = scalar_lea.sflag [#allocation4], %s1777_s6 }
  0x32   : > { %323 = vmatprep.subr.mxu0 %v245_v1  ;;  %460 = vmatprep.subr.mxu1 %v247_v2  ;;  %v243_v6 = vld [vmem:[%s209_s10 + $0x38] sm:$0xff]  ;;  %v240_v7 = vld [vmem:[%s209_s10 + $0x20] sm:$0xff]  ;;  %v242_v8 = vld [vmem:[%s209_s10 + $0x30] sm:$0xff]  ;;  %s1467_s7 = smul.u32 3072, %s1651_s18  ;;  %s1665_s12 = smov [#allocation5]  }
  0x33   : > { %324 = vmatpush1.msra.mxu0 %v244_v3  ;;  %461 = vmatpush1.msra.mxu1 %v246_v4  ;;  %v237_v9 = vld [vmem:[%s209_s10 + $0x8] sm:$0xff]  ;;  %v239_v10 = vld [vmem:[%s209_s10 + $0x18] sm:$0xff]  ;;  %v236_v11 = vld [vmem:[%s209_s10] sm:$0xff]  ;;  %s2164_s5 = scalar_lea.vmem [#allocation5], %s1466_s26  ;;  %s1583_s13 = sshll.u32 %s1665_s12, 4  ;;  %s1584_s13 = int_to_ptr.vmem [resolvable:$false] %s1583_s13 }
  0x34   : > { %325 = vmatprep.subr.mxu0 %v241_v5  ;;  %462 = vmatprep.subr.mxu1 %v243_v6  ;;  %v238_v12 = vld [vmem:[%s209_s10 + $0x10] sm:$0xff]  ;;  %v248_v13 = vld [vmem:[%s2288_s1] sm:$0xff]  ;;  %v249_v14 = vld [vmem:[%s2288_s1 + $0x8] sm:$0xff]  ;;  %s1315_s9 = sshll.u32 %s2164_s5, 4  ;;  %s2233_s27 = scalar_lea.hbm %s2291_s4, %s1467_s7  ;;  %s2235_s9 = int_to_ptr.vmem [resolvable:$true] %s1315_s9 }
  0x35   : > { %326 = vmatpush1.msra.mxu0 %v240_v7  ;;  %463 = vmatpush1.msra.mxu1 %v242_v8  ;;  %v250_v15 = vld [vmem:[%s2288_s1 + $0x10] sm:$0xff]  ;;  %v251_v16 = vld [vmem:[%s2288_s1 + $0x18] sm:$0xff]  ;;  %v252_v17 = vld [vmem:[%s2288_s1 + $0x20] sm:$0xff]  ;;  %s1579_s11 = scalar_lea.vmem %s2235_s9, 3072  ;;  %s1585_s14 = scalar_lea.vmem %s1584_s13, 6144 }
  0x36   : > { %327 = vmatprep.subr.mxu0 %v237_v9  ;;  %464 = vmatprep.subr.mxu1 %v239_v10  ;;  %v253_v18 = vld [vmem:[%s2288_s1 + $0x28] sm:$0xff]  ;;  %v254_v19 = vld [vmem:[%s2288_s1 + $0x30] sm:$0xff]  ;;  %v255_v20 = vld [vmem:[%s2288_s1 + $0x38] sm:$0xff]  ;;  %p1580_p8 = scmp.ne.s32.totalorder %s2235_s9, %s1579_s11  ;;  %p1586_p1 = scmp.lt.s32.totalorder %s2235_s9, %s1584_s13 }
  0x37   : > { %328 = vmatpush1.msra.mxu0 %v236_v11  ;;  %465 = vmatpush1.msra.mxu1 %v238_v12  ;;  %v256_v21 = vld [vmem:[%s2288_s1 + $0x40] sm:$0xff]  ;;  %v257_v22 = vld [vmem:[%s2288_s1 + $0x48] sm:$0xff]  ;;  %v258_v23 = vld [vmem:[%s2288_s1 + $0x50] sm:$0xff]  ;;  %p1587_p3 = scmp.lt.s32.totalorder %s1585_s14, %s1579_s11 }
  0x38   : > { %1408 = vmatmul.mubr.msk.f32.vlgmr.msra.gmra.mxu0 %vm260_vm0, %v248_v13  ;;  %1420 = vmatmul.mubr.msk.f32.vlgmr.msra.gmra.mxu1 %vm260_vm0, %v248_v13  ;;  %v259_v24 = vld [vmem:[%s2288_s1 + $0x58] sm:$0xff]  ;;  %p1581_p12 = pnand %p1580_p8, %p1744_p9 }
  0x39   : > { %367 = vmatprep.mubr.f32.mxu0 %v2292_v0  ;;  %504 = vmatprep.mubr.f32.mxu1 %v2292_v0  ;;  %p1588_p5 = por %p1587_p3, %p1586_p1 }
  0x3a   : > { %p1582_p0 = pneg %p1581_p12 }
  0x3c   : > { %1409 = vmatmul.mubr.msk.f32.gmra.mxu0 %vm260_vm0, %v249_v14  ;;  %1421 = vmatmul.mubr.msk.f32.gmra.mxu1 %vm260_vm0, %v249_v14  ;;  %p1589_p6 = pnand %p1588_p5, %p1582_p0 }
  0x3d   : > { %373 = vmatprep.mubr.f32.mxu0 %v2292_v0  ;;  %510 = vmatprep.mubr.f32.mxu1 %v2292_v0 }
  0x40   : > { %1410 = vmatmul.mubr.msk.f32.gmra.mxu0 %vm260_vm0, %v250_v15  ;;  %1422 = vmatmul.mubr.msk.f32.gmra.mxu1 %vm260_vm0, %v250_v15 }
  0x41   : > { %379 = vmatprep.mubr.f32.mxu0 %v2292_v0  ;;  %516 = vmatprep.mubr.f32.mxu1 %v2292_v0 }
  0x44   : > { %1411 = vmatmul.mubr.msk.f32.gmra.mxu0 %vm260_vm0, %v251_v16  ;;  %1423 = vmatmul.mubr.msk.f32.gmra.mxu1 %vm260_vm0, %v251_v16 }
  0x45   : > { %385 = vmatprep.mubr.f32.mxu0 %v2292_v0  ;;  %522 = vmatprep.mubr.f32.mxu1 %v2292_v0 }
  0x48   : > { %1412 = vmatmul.mubr.msk.f32.gmra.mxu0 %vm260_vm0, %v252_v17  ;;  %1424 = vmatmul.mubr.msk.f32.gmra.mxu1 %vm260_vm0, %v252_v17 }
  0x49   : > { %391 = vmatprep.mubr.f32.mxu0 %v2292_v0  ;;  %528 = vmatprep.mubr.f32.mxu1 %v2292_v0 }
  0x4c   : > { %1413 = vmatmul.mubr.msk.f32.gmra.mxu0 %vm260_vm0, %v253_v18  ;;  %1425 = vmatmul.mubr.msk.f32.gmra.mxu1 %vm260_vm0, %v253_v18 }
  0x4d   : > { %397 = vmatprep.mubr.f32.mxu0 %v2292_v0  ;;  %534 = vmatprep.mubr.f32.mxu1 %v2292_v0 }
  0x50   : > { %1414 = vmatmul.mubr.msk.f32.gmra.mxu0 %vm260_vm0, %v254_v19  ;;  %1426 = vmatmul.mubr.msk.f32.gmra.mxu1 %vm260_vm0, %v254_v19 }
  0x51   : > { %403 = vmatprep.mubr.f32.mxu0 %v2292_v0  ;;  %540 = vmatprep.mubr.f32.mxu1 %v2292_v0 }
  0x54   : > { %1415 = vmatmul.mubr.msk.f32.gmra.mxu0 %vm260_vm0, %v255_v20  ;;  %1427 = vmatmul.mubr.msk.f32.gmra.mxu1 %vm260_vm0, %v255_v20 }
  0x55   : > { %409 = vmatprep.mubr.f32.mxu0 %v2292_v0  ;;  %546 = vmatprep.mubr.f32.mxu1 %v2292_v0 }
  0x58   : > { %1416 = vmatmul.mubr.msk.f32.gmra.mxu0 %vm260_vm0, %v256_v21  ;;  %1428 = vmatmul.mubr.msk.f32.gmra.mxu1 %vm260_vm0, %v256_v21 }
  0x59   : > { %415 = vmatprep.mubr.f32.mxu0 %v2292_v0  ;;  %552 = vmatprep.mubr.f32.mxu1 %v2292_v0 }
  0x5c   : > { %1417 = vmatmul.mubr.msk.f32.gmra.mxu0 %vm260_vm0, %v257_v22  ;;  %1429 = vmatmul.mubr.msk.f32.gmra.mxu1 %vm260_vm0, %v257_v22 }
  0x5d   : > { %421 = vmatprep.mubr.f32.mxu0 %v2292_v0  ;;  %558 = vmatprep.mubr.f32.mxu1 %v2292_v0 }
  0x60   : > { %1418 = vmatmul.mubr.msk.f32.gmra.mxu0 %vm260_vm0, %v258_v23  ;;  %1430 = vmatmul.mubr.msk.f32.gmra.mxu1 %vm260_vm0, %v258_v23 }
  0x61   : > { %427 = vmatprep.mubr.f32.mxu0 %v2292_v0  ;;  %564 = vmatprep.mubr.f32.mxu1 %v2292_v0 }
  0x64   : > { %1419 = vmatmul.mubr.msk.f32.gmra.mxu0 %vm260_vm0, %v259_v24  ;;  %1431 = vmatmul.mubr.msk.f32.gmra.mxu1 %vm260_vm0, %v259_v24 }
  0x65   : > { %668 = vmatprep.mubr.f32.mxu0 %v2292_v0  ;;  %745 = vmatprep.mubr.f32.mxu1 %v2292_v0 }
  0xf8   : > { %v1871_v25 = vpop.f32.mrf.mxu0  ;;  %v1873_v26 = vpop.f32.mrf.mxu1 }
  0xfa   : > { %v1875_v27 = vpop.f32.mrf.mxu0  ;;  %v1877_v28 = vpop.f32.mrf.mxu1 }
  0xfc   : > { %v1879_v29 = vpop.f32.mrf.mxu0  ;;  %v1881_v30 = vpop.f32.mrf.mxu1 }
  0xfe   : > { %v1883_v31 = vpop.f32.mrf.mxu0  ;;  %v1885_v32 = vpop.f32.mrf.mxu1 }
 0x100   : > { %v1887_v33 = vpop.f32.mrf.mxu0  ;;  %v1889_v34 = vpop.f32.mrf.mxu1 }
 0x102   : > { %v1891_v35 = vpop.f32.mrf.mxu0  ;;  %v1893_v36 = vpop.f32.mrf.mxu1 }
 0x103   : > { %2325 = vst [vmem:[#allocation8_spill] sm:$0xff] %v1891_v35  ;;  %2326 = vst [vmem:[#allocation9_spill] sm:$0xff] %v1893_v36 }
 0x104   : > { %v1895_v37 = vpop.f32.mrf.mxu0  ;;  %v1897_v38 = vpop.f32.mrf.mxu1 }
 0x105   : > { %2327 = vst [vmem:[#allocation10_spill] sm:$0xff] %v1895_v37  ;;  %2328 = vst [vmem:[#allocation11_spill] sm:$0xff] %v1897_v38 }
 0x106   : > { %v1899_v39 = vpop.f32.mrf.mxu0  ;;  %v1901_v40 = vpop.f32.mrf.mxu1 }
 0x107   : > { %2329 = vst [vmem:[#allocation12_spill] sm:$0xff] %v1899_v39  ;;  %2330 = vst [vmem:[#allocation13_spill] sm:$0xff] %v1901_v40 }
 0x108   : > { %v1903_v41 = vpop.f32.mrf.mxu0  ;;  %v1905_v42 = vpop.f32.mrf.mxu1 }
 0x109   : > { %2331 = vst [vmem:[#allocation14_spill] sm:$0xff] %v1903_v41  ;;  %2332 = vst [vmem:[#allocation15_spill] sm:$0xff] %v1905_v42 }
 0x10a   : > { %v1907_v43 = vpop.f32.mrf.mxu0  ;;  %v1909_v44 = vpop.f32.mrf.mxu1 }
 0x10b   : > { %2333 = vst [vmem:[#allocation16_spill] sm:$0xff] %v1907_v43  ;;  %2334 = vst [vmem:[#allocation17_spill] sm:$0xff] %v1909_v44 }
 0x10c   : > { %v1911_v45 = vpop.f32.mrf.mxu0  ;;  %v1913_v46 = vpop.f32.mrf.mxu1 }
 0x10d   : > { %2335 = vst [vmem:[#allocation18_spill] sm:$0xff] %v1911_v45  ;;  %2336 = vst [vmem:[#allocation19_spill] sm:$0xff] %v1913_v46 }
 0x10e   : > { %v1915_v47 = vpop.f32.mrf.mxu0  ;;  %v1917_v48 = vpop.f32.mrf.mxu1 }
 0x10f   : > { %2337 = vst [vmem:[#allocation20_spill] sm:$0xff] %v1915_v47  ;;  %2338 = vst [vmem:[#allocation21_spill] sm:$0xff] %v1917_v48 }
 0x110   : > { %v1919_v49 = vpop.f32.mrf.mxu0  ;;  %v1921_v50 = vpop.f32.mrf.mxu1 }
 0x112   : > { %v1923_v51 = vpop.f32.mrf.mxu0  ;;  %v1925_v52 = vpop.f32.mrf.mxu1 }
 0x114   : > { %v1927_v53 = vpop.f32.mrf.mxu0  ;;  %v1929_v54 = vpop.f32.mrf.mxu1 }
 0x116   : > { %v1931_v55 = vpop.f32.mrf.mxu0  ;;  %v1933_v56 = vpop.f32.mrf.mxu1 }
 0x118   : > { %v1935_v57 = vpop.f32.mrf.mxu0  ;;  %v1937_v58 = vpop.f32.mrf.mxu1 }
 0x119   : > { %v581_v24 = vmul.f32 %v1935_v57, %v1887_v33 }
 0x11a   : > { %v1939_v59 = vpop.f32.mrf.mxu0  ;;  %v1941_v60 = vpop.f32.mrf.mxu1 }
 0x11b   : > { %v582_v22 = vmul.f32 %v1939_v59, %v1891_v35  ;;  %v584_v23 = vmul.f32 %v1941_v60, %v1893_v36 }
 0x11c   : > { %v1943_v61 = vpop.f32.mrf.mxu0  ;;  %v1945_v62 = vpop.f32.mrf.mxu1 }
 0x11d   : > { %2339 = vst [vmem:[#allocation22_spill] sm:$0xff] %v1943_v61  ;;  %2340 = vst [vmem:[#allocation23_spill] sm:$0xff] %v1945_v62  ;;  %v585_v20 = vmul.f32 %v1943_v61, %v1895_v37  ;;  %v587_v21 = vmul.f32 %v1945_v62, %v1897_v38 }
 0x11e   : > { %v1947_v63 = vpop.f32.mrf.mxu0  ;;  %v1949_v1 = vpop.f32.mrf.mxu1 }
 0x11f   : > { %2341 = vst [vmem:[#allocation24_spill] sm:$0xff] %v1947_v63  ;;  %2342 = vst [vmem:[#allocation25_spill] sm:$0xff] %v1949_v1  ;;  %v586_v18 = vmul.f32 %v1947_v63, %v1899_v39  ;;  %v588_v19 = vmul.f32 %v1949_v1, %v1901_v40 }
 0x120   : > { %v1951_v2 = vpop.f32.mrf.mxu0  ;;  %v1953_v3 = vpop.f32.mrf.mxu1 }
 0x121   : > { %2343 = vst [vmem:[#allocation26_spill] sm:$0xff] %v1951_v2  ;;  %2344 = vst [vmem:[#allocation27_spill] sm:$0xff] %v1953_v3  ;;  %v589_v16 = vmul.f32 %v1951_v2, %v1903_v41  ;;  %v591_v17 = vmul.f32 %v1953_v3, %v1905_v42 }
 0x122   : > { %v1955_v4 = vpop.f32.mrf.mxu0  ;;  %v1957_v5 = vpop.f32.mrf.mxu1 }
 0x123   : > { %2345 = vst [vmem:[#allocation28_spill] sm:$0xff] %v1955_v4  ;;  %2346 = vst [vmem:[#allocation29_spill] sm:$0xff] %v1957_v5  ;;  %v590_v14 = vmul.f32 %v1955_v4, %v1907_v43  ;;  %v592_v15 = vmul.f32 %v1957_v5, %v1909_v44 }
 0x124   : > { %v1959_v6 = vpop.f32.mrf.mxu0  ;;  %v1961_v7 = vpop.f32.mrf.mxu1 }
 0x125   : > { %2347 = vst [vmem:[#allocation30_spill] sm:$0xff] %v1959_v6  ;;  %2348 = vst [vmem:[#allocation31_spill] sm:$0xff] %v1961_v7  ;;  %v593_v12 = vmul.f32 %v1959_v6, %v1911_v45  ;;  %v595_v13 = vmul.f32 %v1961_v7, %v1913_v46 }
 0x126   : > { %v1963_v8 = vpop.f32.mrf.mxu0  ;;  %v1965_v9 = vpop.f32.mrf.mxu1 }
 0x127   : > { %2349 = vst [vmem:[#allocation32_spill] sm:$0xff] %v1963_v8  ;;  %2350 = vst [vmem:[#allocation33_spill] sm:$0xff] %v1965_v9  ;;  %v594_v10 = vmul.f32 %v1963_v8, %v1915_v47  ;;  %v596_v11 = vmul.f32 %v1965_v9, %v1917_v48 }
 0x129   : > { %624 = vmatprep.subr.mxu0 %v594_v10  ;;  %701 = vmatprep.subr.mxu1 %v596_v11  ;;  %v583_v10 = vmul.f32 %v1937_v58, %v1889_v34  ;;  %v578_v11 = vmul.f32 %v1931_v55, %v1883_v31 }
 0x12a   : > { %625 = vmatpush1.msra.mxu0 %v593_v12  ;;  %702 = vmatpush1.msra.mxu1 %v595_v13  ;;  %v580_v12 = vmul.f32 %v1933_v56, %v1885_v32  ;;  %v577_v13 = vmul.f32 %v1927_v53, %v1879_v29 }
 0x12b   : > { %626 = vmatprep.subr.mxu0 %v590_v14  ;;  %703 = vmatprep.subr.mxu1 %v592_v15  ;;  %v579_v14 = vmul.f32 %v1929_v54, %v1881_v30  ;;  %v574_v15 = vmul.f32 %v1923_v51, %v1875_v27 }
 0x12c   : > { %627 = vmatpush1.msra.mxu0 %v589_v16  ;;  %704 = vmatpush1.msra.mxu1 %v591_v17  ;;  %v576_v16 = vmul.f32 %v1925_v52, %v1877_v28  ;;  %v573_v17 = vmul.f32 %v1919_v49, %v1871_v25 }
 0x12d   : > { %628 = vmatprep.subr.mxu0 %v586_v18  ;;  %705 = vmatprep.subr.mxu1 %v588_v19  ;;  %v575_v18 = vmul.f32 %v1921_v50, %v1873_v26  ;;  %v779_v19 = vmul.f32 %v1963_v8, %v1963_v8 }
 0x12e   : > { %629 = vmatpush1.msra.mxu0 %v585_v20  ;;  %706 = vmatpush1.msra.mxu1 %v587_v21  ;;  %v781_v20 = vmul.f32 %v1965_v9, %v1965_v9  ;;  %v571_v21 = vld [vmem:[%s2289_s2] sm:$0xff] }
 0x12f   : > { %630 = vmatprep.subr.mxu0 %v582_v22  ;;  %707 = vmatprep.subr.mxu1 %v584_v23  ;;  %v778_v22 = vmul.f32 %v1959_v6, %v1959_v6  ;;  %v780_v23 = vmul.f32 %v1961_v7, %v1961_v7 }
 0x130   : > { %631 = vmatpush1.msra.mxu0 %v581_v24  ;;  %708 = vmatpush1.msra.mxu1 %v583_v10  ;;  %v775_v24 = vmul.f32 %v1955_v4, %v1955_v4  ;;  %v777_v10 = vmul.f32 %v1957_v5, %v1957_v5 }
 0x131   : > { %632 = vmatprep.subr.mxu0 %v578_v11  ;;  %709 = vmatprep.subr.mxu1 %v580_v12  ;;  %v774_v11 = vmul.f32 %v1951_v2, %v1951_v2  ;;  %v776_v12 = vmul.f32 %v1953_v3, %v1953_v3 }
 0x132   : > { %633 = vmatpush1.msra.mxu0 %v577_v13  ;;  %710 = vmatpush1.msra.mxu1 %v579_v14  ;;  %v771_v13 = vmul.f32 %v1947_v63, %v1947_v63  ;;  %v773_v14 = vmul.f32 %v1949_v1, %v1949_v1 }
 0x133   : > { %634 = vmatprep.subr.mxu0 %v574_v15  ;;  %711 = vmatprep.subr.mxu1 %v576_v16  ;;  %v770_v15 = vmul.f32 %v1943_v61, %v1943_v61  ;;  %v772_v16 = vmul.f32 %v1945_v62, %v1945_v62 }
 0x134   : > { %635 = vmatpush1.msra.mxu0 %v573_v17  ;;  %712 = vmatpush1.msra.mxu1 %v575_v18  ;;  %v767_v17 = vmul.f32 %v1939_v59, %v1939_v59  ;;  %v769_v18 = vmul.f32 %v1941_v60, %v1941_v60 }
 0x135   : > { %802 = vmatprep.subr.mxu0 %v779_v19  ;;  %879 = vmatprep.subr.mxu1 %v781_v20  ;;  %v766_v19 = vmul.f32 %v1935_v57, %v1935_v57  ;;  %v768_v20 = vmul.f32 %v1937_v58, %v1937_v58 }
 0x136   : > { %1432 = vmatmul.mubr.msk.f32.vlgmr.msra.gmra.mxu0 %vm597_vm1, %v571_v21  ;;  %1434 = vmatmul.mubr.msk.f32.vlgmr.msra.gmra.mxu1 %vm597_vm1, %v571_v21 }
 0x137   : > { %803 = vmatpush1.msra.mxu0 %v778_v22  ;;  %880 = vmatpush1.msra.mxu1 %v780_v23  ;;  %v572_v22 = vld [vmem:[%s2289_s2 + $0x8] sm:$0xff]  ;;  %v763_v23 = vmul.f32 %v1931_v55, %v1931_v55 }
 0x138   : > { %804 = vmatprep.subr.mxu0 %v775_v24  ;;  %881 = vmatprep.subr.mxu1 %v777_v10  ;;  %v765_v24 = vmul.f32 %v1933_v56, %v1933_v56  ;;  %v762_v10 = vmul.f32 %v1927_v53, %v1927_v53 }
 0x139   : > { %805 = vmatpush1.msra.mxu0 %v774_v11  ;;  %882 = vmatpush1.msra.mxu1 %v776_v12  ;;  %v764_v11 = vmul.f32 %v1929_v54, %v1929_v54  ;;  %v759_v12 = vmul.f32 %v1923_v51, %v1923_v51 }
 0x13a   : > { %806 = vmatprep.subr.mxu0 %v771_v13  ;;  %883 = vmatprep.subr.mxu1 %v773_v14  ;;  %v761_v13 = vmul.f32 %v1925_v52, %v1925_v52  ;;  %v758_v14 = vmul.f32 %v1919_v49, %v1919_v49 }
 0x13b   : > { %807 = vmatpush1.msra.mxu0 %v770_v15  ;;  %884 = vmatpush1.msra.mxu1 %v772_v16  ;;  %v760_v15 = vmul.f32 %v1921_v50, %v1921_v50 }
 0x13c   : > { %808 = vmatprep.subr.mxu0 %v767_v17  ;;  %885 = vmatprep.subr.mxu1 %v769_v18 }
 0x13d   : > { %674 = vmatprep.mubr.f32.mxu0 %v2292_v0  ;;  %751 = vmatprep.mubr.f32.mxu1 %v2292_v0 }
 0x13e   : > { %809 = vmatpush1.msra.mxu0 %v766_v19  ;;  %886 = vmatpush1.msra.mxu1 %v768_v20 }
 0x13f   : > { %1433 = vmatmul.mubr.msk.f32.gmra.mxu0 %vm597_vm1, %v572_v22  ;;  %1435 = vmatmul.mubr.msk.f32.gmra.mxu1 %vm597_vm1, %v572_v22 }
 0x140   : > { %810 = vmatprep.subr.mxu0 %v763_v23  ;;  %887 = vmatprep.subr.mxu1 %v765_v24 }
 0x141   : > { %811 = vmatpush1.msra.mxu0 %v762_v10  ;;  %888 = vmatpush1.msra.mxu1 %v764_v11 }
 0x142   : > { %812 = vmatprep.subr.mxu0 %v759_v12  ;;  %889 = vmatprep.subr.mxu1 %v761_v13 }
 0x143   : > { %813 = vmatpush1.msra.mxu0 %v758_v14  ;;  %846 = vmatprep.mubr.f32.mxu0 %v2292_v0 }
 0x144   : > { %890 = vmatpush1.msra.mxu1 %v760_v15  ;;  %923 = vmatprep.mubr.f32.mxu1 %v2292_v0 }
 0x145   : > { %1436 = vmatmul.mubr.msk.f32.vlgmr.msra.gmra.mxu0 %vm597_vm1, %v571_v21  ;;  %1438 = vmatmul.mubr.msk.f32.vlgmr.msra.gmra.mxu1 %vm597_vm1, %v571_v21 }
 0x146   : > { %852 = vmatprep.mubr.f32.mxu0 %v2292_v0  ;;  %929 = vmatprep.mubr.f32.mxu1 %v2292_v0 }
 0x149   : > { %1437 = vmatmul.mubr.msk.f32.gmra.mxu0 %vm597_vm1, %v572_v22  ;;  %1439 = vmatmul.mubr.msk.f32.gmra.mxu1 %vm597_vm1, %v572_v22 }
 0x14a   : > { %1089 = vmatprep.mubr.f32.mxu0 %v2292_v0  ;;  %1190 = vmatprep.mubr.f32.mxu1 %v2292_v0 }
 0x1f6   : > { %v2085_v16 = vpop.f32.mrf.mxu0  ;;  %v2087_v17 = vpop.f32.mrf.mxu1 }
 0x1f7   : > { %v976_v37 = vmul.f32 0.8, %v2085_v16  ;;  %vm968_vm8 = vcmp.lt.f32.partialorder %v2085_v16, 0.0  ;;  %vm970_vm10 = vcmp.lt.f32.partialorder %v2087_v17, 0.0 }
 0x1f8   : > { %v2089_v18 = vpop.f32.mrf.mxu0  ;;  %v2091_v19 = vpop.f32.mrf.mxu1 }
 0x1f9   : > { %v979_v35 = vmul.f32 0.8, %v2091_v19  ;;  %vm969_vm6 = vcmp.lt.f32.partialorder %v2089_v18, 0.0  ;;  %vm971_vm9 = vcmp.lt.f32.partialorder %v2091_v19, 0.0 }
 0x1ff   : > { %v2093_v21 = vpop.f32.mrf.mxu0  ;;  %v2095_v20 = vpop.f32.mrf.mxu1 }
 0x200   : > { %vm972_vm4 = vcmp.lt.f32.partialorder %v2093_v21, 0.0  ;;  %vm974_vm7 = vcmp.lt.f32.partialorder %v2095_v20, 0.0 }
 0x201   : > { %v2097_v23 = vpop.f32.mrf.mxu0  ;;  %v2099_v24 = vpop.f32.mrf.mxu1 }
 0x202   : > { %vm973_vm3 = vcmp.lt.f32.partialorder %v2097_v23, 0.0  ;;  %vm975_vm5 = vcmp.lt.f32.partialorder %v2099_v24, 0.0 }
 0x205   : > { %v848_v22 = vpop.f32.mrf.mxu0  ;;  %v925_v10 = vpop.f32.mrf.mxu1 }
 0x206   : > { %v849_v11 = vadd.f32 1e-06, %v848_v22  ;;  %v926_v12 = vadd.f32 1e-06, %v925_v10 }
 0x207   : > { %v850_v13 = vpop.f32.mrf.mxu0  ;;  %v927_v14 = vpop.f32.mrf.mxu1 }
 0x208   : > { %1535 = vrcp.f32 %v849_v11  ;;  %v851_v15 = vadd.f32 1e-06, %v850_v13  ;;  %v928_v0 = vadd.f32 1e-06, %v927_v14 }
 0x209   : > { %1537 = vrcp.f32 %v926_v12  ;;  %v854_v48 = vpop.f32.mrf.mxu0  ;;  %v931_v47 = vpop.f32.mrf.mxu1 }
 0x20a   : > { %1539 = vrcp.f32 %v851_v15  ;;  %v855_v9 = vadd.f32 1e-06, %v854_v48  ;;  %v932_v46 = vadd.f32 1e-06, %v931_v47 }
 0x20b   : > { %1541 = vrcp.f32 %v928_v0  ;;  %v856_v8 = vpop.f32.mrf.mxu0  ;;  %v933_v45 = vpop.f32.mrf.mxu1 }
 0x20c   : > { %1543 = vrcp.f32 %v855_v9  ;;  %v857_v7 = vadd.f32 1e-06, %v856_v8  ;;  %v934_v44 = vadd.f32 1e-06, %v933_v45 }
 0x20d   : > { %1545 = vrcp.f32 %v932_v46 }
 0x20e   : > { %1547 = vrcp.f32 %v857_v7 }
 0x20f   : > { %1549 = vrcp.f32 %v934_v44 }
 0x215   : > { %v1536_v22 = vpop.eup %1535 }
 0x216   : > { %v1538_v10 = vpop.eup %1537  ;;  %v944_v5 = vmul.f32 %v1536_v22, %v849_v11  ;;  %v980_v11 = vmul.f32 0.8, %v2093_v21 }
 0x217   : > { %v1540_v6 = vpop.eup %1539  ;;  %v946_v48 = vmul.f32 %v1538_v10, %v926_v12 }
 0x218   : > { %v1542_v13 = vpop.eup %1541  ;;  %v945_v14 = vmul.f32 %v1540_v6, %v851_v15  ;;  %v952_v39 = vsub.f32 2.0, %v944_v5 }
 0x219   : > { %v1544_v43 = vpop.eup %1543  ;;  %v947_v42 = vmul.f32 %v1542_v13, %v928_v0  ;;  %v954_v62 = vsub.f32 2.0, %v946_v48  ;;  %v978_v0 = vmul.f32 0.8, %v2087_v17  ;;  %v977_v48 = vmul.f32 0.8, %v2089_v18 }
 0x21a   : > { %v1546_v4 = vpop.eup %1545  ;;  %v948_v47 = vmul.f32 %v1544_v43, %v855_v9  ;;  %v953_v2 = vsub.f32 2.0, %v945_v14 }
 0x21b   : > { %v1548_v41 = vpop.eup %1547  ;;  %v950_v3 = vmul.f32 %v1546_v4, %v932_v46  ;;  %v955_v1 = vsub.f32 2.0, %v947_v42  ;;  %v981_v46 = vmul.f32 0.8, %v2097_v23  ;;  %v983_v42 = vmul.f32 0.8, %v2099_v24 }
 0x21c   : > { %v1550_v40 = vpop.eup %1549  ;;  %v956_v8 = vsub.f32 2.0, %v948_v47  ;;  %v949_v45 = vmul.f32 %v1548_v41, %v857_v7  ;;  %v961_v14 = vmul.f32 %v1540_v6, %v953_v2  ;;  %v962_v36 = vmul.f32 %v1538_v10, %v954_v62  ;;  %v1000_v62 = vld [vmem:[%s2290_s3] sm:$0xff] }
 0x21d   : > { %v958_v38 = vsub.f32 2.0, %v950_v3  ;;  %v951_v63 = vmul.f32 %v1550_v40, %v934_v44  ;;  %v960_v3 = vmul.f32 %v1536_v22, %v952_v39  ;;  %v963_v44 = vmul.f32 %v1542_v13, %v955_v1  ;;  %v1004_v2 = vld [vmem:[%s2290_s3 + $0x20] sm:$0xff] }
 0x21e   : > { %v957_v15 = vsub.f32 2.0, %v949_v45  ;;  %v964_v9 = vmul.f32 %v1544_v43, %v956_v8  ;;  %v982_v45 = vmul.f32 0.8, %v2095_v20  ;;  %v986_v1 = vmul.f32 %v978_v0, %v962_v36  ;;  %v1002_v36 = vld [vmem:[%s2290_s3 + $0x10] sm:$0xff] }
 0x21f   : > { %v959_v12 = vsub.f32 2.0, %v951_v63  ;;  %v966_v47 = vmul.f32 %v1546_v4, %v958_v38  ;;  %v985_v38 = vmul.f32 %v977_v48, %v961_v14  ;;  %v1005_v4 = vld [vmem:[%s2290_s3 + $0x28] sm:$0xff]  ;;  %v2352_v14 = vld [vmem:[#allocation8_spill] sm:$0xff] }
 0x220   : > { %v965_v7 = vmul.f32 %v1548_v41, %v957_v15  ;;  %v988_v43 = vmul.f32 %v980_v11, %v964_v9  ;;  %v987_v41 = vmul.f32 %v979_v35, %v963_v44  ;;  %v2351_v35 = vmov 0.0  }
 0x221   : > { %v967_v5 = vmul.f32 %v1550_v40, %v959_v12  ;;  %v990_v39 = vmul.f32 %v982_v45, %v966_v47  ;;  %v984_v40 = vmul.f32 %v976_v37, %v960_v3  ;;  %v1001_v37 = vld [vmem:[%s2290_s3 + $0x8] sm:$0xff] }
 0x222   : > { %v989_v61 = vmul.f32 %v981_v46, %v965_v7 }
 0x223   : > { %v991_v63 = vmul.f32 %v983_v42, %v967_v5  ;;  %v2354_v42 = vld [vmem:[#allocation9_spill] sm:$0xff]  ;;  %v2356_v5 = vld [vmem:[#allocation10_spill] sm:$0xff] }
 0x224   : > { %1440 = vmatprep.subr.msk.mxu0 %vm973_vm3, %v989_v61  ;;  %v1003_v61 = vld [vmem:[%s2290_s3 + $0x18] sm:$0xff] }
 0x225   : > { %1450 = vmatprep.subr.msk.mxu1 %vm975_vm5, %v991_v63  ;;  %1441 = vmatpush1.msk.msra.mxu0 %vm972_vm4, %v988_v43  ;;  %v2358_v43 = vld [vmem:[#allocation11_spill] sm:$0xff] }
 0x226   : > { %1451 = vmatpush1.msk.msra.mxu1 %vm974_vm7, %v990_v39  ;;  %1442 = vmatprep.subr.msk.mxu0 %vm969_vm6, %v985_v38  ;;  %v2359_v38 = vld [vmem:[#allocation25_spill] sm:$0xff] }
 0x227   : > { %1452 = vmatprep.subr.msk.mxu1 %vm971_vm9, %v987_v41  ;;  %1443 = vmatpush1.msk.msra.mxu0 %vm968_vm8, %v984_v40  ;;  %v2360_v41 = vld [vmem:[#allocation12_spill] sm:$0xff] }
 0x228   : > { %1453 = vmatpush1.msk.msra.mxu1 %vm970_vm10, %v986_v1  ;;  %1444 = vmatmul.mubr.msk.f32.vlgmr.msra.gmra.mxu0 %vm1006_vm2, %v1000_v62  ;;  %v2361_v1 = vld [vmem:[#allocation26_spill] sm:$0xff] }
 0x229   : > { %1454 = vmatmul.mubr.msk.f32.vlgmr.msra.gmra.mxu1 %vm1006_vm2, %v1000_v62  ;;  %1095 = vmatprep.mubr.f32.mxu0 %v2351_v35 }
 0x22a   : > { %1196 = vmatprep.mubr.f32.mxu1 %v2351_v35 }
 0x22c   : > { %1445 = vmatmul.mubr.msk.f32.gmra.mxu0 %vm1006_vm2, %v1001_v37 }
 0x22d   : > { %1455 = vmatmul.mubr.msk.f32.gmra.mxu1 %vm1006_vm2, %v1001_v37  ;;  %1101 = vmatprep.mubr.f32.mxu0 %v2351_v35 }
 0x22e   : > { %1202 = vmatprep.mubr.f32.mxu1 %v2351_v35 }
 0x230   : > { %1446 = vmatmul.mubr.msk.f32.gmra.mxu0 %vm1006_vm2, %v1002_v36 }
 0x231   : > { %1456 = vmatmul.mubr.msk.f32.gmra.mxu1 %vm1006_vm2, %v1002_v36  ;;  %1107 = vmatprep.mubr.f32.mxu0 %v2351_v35  ;;  %v2362_v36 = vld [vmem:[#allocation13_spill] sm:$0xff] }
 0x232   : > { %1208 = vmatprep.mubr.f32.mxu1 %v2351_v35 }
 0x234   : > { %1447 = vmatmul.mubr.msk.f32.gmra.mxu0 %vm1006_vm2, %v1003_v61 }
 0x235   : > { %1457 = vmatmul.mubr.msk.f32.gmra.mxu1 %vm1006_vm2, %v1003_v61  ;;  %1113 = vmatprep.mubr.f32.mxu0 %v2351_v35 }
 0x236   : > { %1214 = vmatprep.mubr.f32.mxu1 %v2351_v35 }
 0x238   : > { %1448 = vmatmul.mubr.msk.f32.gmra.mxu0 %vm1006_vm2, %v1004_v2 }
 0x239   : > { %1458 = vmatmul.mubr.msk.f32.gmra.mxu1 %vm1006_vm2, %v1004_v2  ;;  %1119 = vmatprep.mubr.f32.mxu0 %v2351_v35  ;;  %v2363_v2 = vld [vmem:[#allocation27_spill] sm:$0xff] }
 0x23a   : > { %1220 = vmatprep.mubr.f32.mxu1 %v2351_v35 }
 0x23c   : > { %1449 = vmatmul.mubr.msk.f32.gmra.mxu0 %vm1006_vm2, %v1005_v4 }
 0x23d   : > { %1459 = vmatmul.mubr.msk.f32.gmra.mxu1 %vm1006_vm2, %v1005_v4 }
 0x2e8   : > { %v1091_v6 = vpop.f32.mrf.mxu0 }
 0x2e9   : > { %v1227_v16 = vmul.f32 %v1091_v6, %v1919_v49  ;;  %v1192_v17 = vpop.f32.mrf.mxu1 }
 0x2ea   : > { %v1229_v18 = vmul.f32 %v1192_v17, %v1921_v50  ;;  %v1093_v19 = vpop.f32.mrf.mxu0 }
 0x2eb   : > { %v1251_v21 = vsub.f32 %v1871_v25, %v1227_v16  ;;  %v1228_v20 = vmul.f32 %v1093_v19, %v1923_v51  ;;  %v1194_v23 = vpop.f32.mrf.mxu1  ;;  %v2364_v16 = vld [vmem:[#allocation14_spill] sm:$0xff] }
 0x2ec   : > { %v1253_v24 = vsub.f32 %v1873_v26, %v1229_v18  ;;  %v1230_v22 = vmul.f32 %v1194_v23, %v1925_v52  ;;  %v1097_v10 = vpop.f32.mrf.mxu0  ;;  %v2365_v18 = vld [vmem:[#allocation28_spill] sm:$0xff] }
 0x2ed   : > { %1275 = vst [vmem:[%s2164_s5] sm:$0xff] %v1251_v21  ;;  %v1252_v49 = vsub.f32 %v1875_v27, %v1228_v20  ;;  %v1231_v25 = vmul.f32 %v1097_v10, %v1927_v53  ;;  %v1198_v50 = vpop.f32.mrf.mxu1  ;;  %v2366_v20 = vld [vmem:[#allocation15_spill] sm:$0xff] }
 0x2ee   : > { %1277 = vst [vmem:[%s2164_s5 + $0x10] sm:$0xff] %v1253_v24  ;;  %v1254_v26 = vsub.f32 %v1877_v28, %v1230_v22  ;;  %v1233_v51 = vmul.f32 %v1198_v50, %v1929_v54  ;;  %v1099_v52 = vpop.f32.mrf.mxu0  ;;  %v2367_v24 = vld [vmem:[#allocation29_spill] sm:$0xff]  ;;  %v2369_v50 = vld [vmem:[#allocation30_spill] sm:$0xff] }
 0x2ef   : > { %1276 = vst [vmem:[%s2164_s5 + $0x8] sm:$0xff] %v1252_v49  ;;  %v1255_v13 = vsub.f32 %v1879_v29, %v1231_v25  ;;  %v1232_v8 = vmul.f32 %v1099_v52, %v1931_v55  ;;  %v1200_v15 = vpop.f32.mrf.mxu1  ;;  %v2368_v49 = vld [vmem:[#allocation16_spill] sm:$0xff]  ;;  %v2370_v52 = vld [vmem:[#allocation17_spill] sm:$0xff] }
 0x2f0   : > { %1278 = vst [vmem:[%s2164_s5 + $0x18] sm:$0xff] %v1254_v26  ;;  %v1257_v27 = vsub.f32 %v1881_v30, %v1233_v51  ;;  %v1234_v53 = vmul.f32 %v1200_v15, %v1933_v56  ;;  %v1103_v0 = vpop.f32.mrf.mxu0 }
 0x2f1   : > { %1279 = vst [vmem:[%s2164_s5 + $0x20] sm:$0xff] %v1255_v13  ;;  %v1256_v28 = vsub.f32 %v1883_v31, %v1232_v8  ;;  %v1235_v54 = vmul.f32 %v1103_v0, %v1935_v57  ;;  %v1204_v11 = vpop.f32.mrf.mxu1  ;;  %v2371_v8 = vld [vmem:[#allocation31_spill] sm:$0xff] }
 0x2f2   : > { %1281 = vst [vmem:[%s2164_s5 + $0x30] sm:$0xff] %v1257_v27  ;;  %v1258_v29 = vsub.f32 %v1885_v32, %v1234_v53  ;;  %v1237_v55 = vmul.f32 %v1204_v11, %v1937_v58  ;;  %v1105_v9 = vpop.f32.mrf.mxu0  ;;  %v2353_v58 = vld [vmem:[#allocation22_spill] sm:$0xff] }
 0x2f3   : > { %1280 = vst [vmem:[%s2164_s5 + $0x28] sm:$0xff] %v1256_v28  ;;  %v1259_v30 = vsub.f32 %v1887_v33, %v1235_v54  ;;  %v1236_v56 = vmul.f32 %v1105_v9, %v1939_v59  ;;  %v1206_v12 = vpop.f32.mrf.mxu1  ;;  %v2355_v59 = vld [vmem:[#allocation23_spill] sm:$0xff]  ;;  %v2372_v53 = vld [vmem:[#allocation18_spill] sm:$0xff]  ;;  %v2373_v28 = vld [vmem:[#allocation32_spill] sm:$0xff] }
 0x2f4   : > { %1282 = vst [vmem:[%s2164_s5 + $0x38] sm:$0xff] %v1258_v29  ;;  %v1261_v31 = vsub.f32 %v1889_v34, %v1237_v55  ;;  %v1238_v57 = vmul.f32 %v1206_v12, %v1941_v60  ;;  %v1109_v46 = vpop.f32.mrf.mxu0  ;;  %v2357_v60 = vld [vmem:[#allocation24_spill] sm:$0xff]  ;;  %v2374_v29 = vld [vmem:[#allocation19_spill] sm:$0xff]  ;;  %v2375_v9 = vld [vmem:[#allocation33_spill] sm:$0xff] }
 0x2f5   : > { %1283 = vst [vmem:[%s2164_s5 + $0x40] sm:$0xff] %v1259_v30  ;;  %v1260_v32 = vsub.f32 %v2352_v14, %v1236_v56  ;;  %v1239_v47 = vmul.f32 %v1109_v46, %v2353_v58  ;;  %v1210_v7 = vpop.f32.mrf.mxu1  ;;  %v2376_v56 = vld [vmem:[#allocation20_spill] sm:$0xff] }
 0x2f6   : > { %1285 = vst [vmem:[%s2164_s5 + $0x50] sm:$0xff] %v1261_v31  ;;  %v1262_v33 = vsub.f32 %v2354_v42, %v1238_v57  ;;  %v1241_v3 = vmul.f32 %v1210_v7, %v2355_v59  ;;  %v1111_v44 = vpop.f32.mrf.mxu0  ;;  %v2377_v31 = vld [vmem:[#allocation21_spill] sm:$0xff] }
 0x2f7   : > { %1284 = vst [vmem:[%s2164_s5 + $0x48] sm:$0xff] %v1260_v32  ;;  %v1263_v34 = vsub.f32 %v2356_v5, %v1239_v47  ;;  %v1240_v48 = vmul.f32 %v1111_v44, %v2357_v60  ;;  %v1212_v45 = vpop.f32.mrf.mxu1 }
 0x2f8   : > { %1286 = vst [vmem:[%s2164_s5 + $0x58] sm:$0xff] %v1262_v33  ;;  %v1265_v63 = vsub.f32 %v2358_v43, %v1241_v3  ;;  %v1242_v39 = vmul.f32 %v1212_v45, %v2359_v38  ;;  %v1115_v40 = vpop.f32.mrf.mxu0 }
 0x2f9   : > { %1287 = vst [vmem:[%s2164_s5 + $0x60] sm:$0xff] %v1263_v34  ;;  %v1264_v62 = vsub.f32 %v2360_v41, %v1240_v48  ;;  %v1243_v35 = vmul.f32 %v1115_v40, %v2361_v1  ;;  %v1216_v37 = vpop.f32.mrf.mxu1 }
 0x2fa   : > { %1289 = vst [vmem:[%s2164_s5 + $0x70] sm:$0xff] %v1265_v63  ;;  %v1266_v61 = vsub.f32 %v2362_v36, %v1242_v39  ;;  %v1245_v4 = vmul.f32 %v1216_v37, %v2363_v2  ;;  %v1117_v6 = vpop.f32.mrf.mxu0 }
 0x2fb   : > { %1288 = vst [vmem:[%s2164_s5 + $0x68] sm:$0xff] %v1264_v62  ;;  %v1267_v17 = vsub.f32 %v2364_v16, %v1243_v35  ;;  %v1244_v19 = vmul.f32 %v1117_v6, %v2365_v18  ;;  %v1218_v21 = vpop.f32.mrf.mxu1 }
 0x2fc   : > { %1290 = vst [vmem:[%s2164_s5 + $0x78] sm:$0xff] %v1266_v61  ;;  %v1269_v23 = vsub.f32 %v2366_v20, %v1245_v4  ;;  %v1246_v22 = vmul.f32 %v1218_v21, %v2367_v24  ;;  %v1121_v10 = vpop.f32.mrf.mxu0 }
 0x2fd   : > { %1291 = vst [vmem:[%s2164_s5 + $0x80] sm:$0xff] %v1267_v17  ;;  %v1268_v25 = vsub.f32 %v2368_v49, %v1244_v19  ;;  %v1247_v26 = vmul.f32 %v1121_v10, %v2369_v50  ;;  %v1222_v51 = vpop.f32.mrf.mxu1 }
 0x2fe   : > { %1293 = vst [vmem:[%s2164_s5 + $0x90] sm:$0xff] %v1269_v23  ;;  %v1270_v13 = vsub.f32 %v2370_v52, %v1246_v22  ;;  %v1249_v15 = vmul.f32 %v1222_v51, %v2371_v8  ;;  %v1123_v27 = vpop.f32.mrf.mxu0 }
 0x2ff   : > { %1292 = vst [vmem:[%s2164_s5 + $0x88] sm:$0xff] %v1268_v25  ;;  %v1271_v0 = vsub.f32 %v2372_v53, %v1247_v26  ;;  %v1248_v54 = vmul.f32 %v1123_v27, %v2373_v28  ;;  %v1224_v11 = vpop.f32.mrf.mxu1 }
 0x300   : > { %1294 = vst [vmem:[%s2164_s5 + $0x98] sm:$0xff] %v1270_v13  ;;  %v1273_v55 = vsub.f32 %v2374_v29, %v1249_v15  ;;  %v1250_v30 = vmul.f32 %v1224_v11, %v2375_v9 }
 0x301   : > { %1295 = vst [vmem:[%s2164_s5 + $0xa0] sm:$0xff] %v1271_v0  ;;  %v1272_v12 = vsub.f32 %v2376_v56, %v1248_v54 }
 0x302   : > { %1297 = vst [vmem:[%s2164_s5 + $0xb0] sm:$0xff] %v1273_v55  ;;  %v1274_v57 = vsub.f32 %v2377_v31, %v1250_v30 }
 0x303   : > { %1296 = vst [vmem:[%s2164_s5 + $0xa8] sm:$0xff] %v1272_v12 }
 0x304   : > { %1298 = vst [vmem:[%s2164_s5 + $0xb8] sm:$0xff] %v1274_v57 }
 0x305   : > { %1592 = shalt.err (!%p1589_p6)
}
 0x306   : > { %s1593_s21 = scalar_lea.hbm %s2233_s27, 3072  ;;  %s1597_s25 = scalar_lea.hbm %s2291_s4, 6144 }
 0x307   : > { %p1594_p4 = scmp.ne.s32.totalorder %s2233_s27, %s1593_s21  ;;  %p1598_p13 = scmp.lt.s32.totalorder %s2233_s27, %s2291_s4 }
 0x308   : > { %p1599_p2 = scmp.lt.s32.totalorder %s1597_s25, %s1593_s21 }
 0x309   : > { %p1595_p7 = pnand %p1594_p4, %p1744_p9 }
 0x30a   : > { %p1600_p8 = por %p1599_p2, %p1598_p13 }
 0x30b   : > { %p1596_p10 = pneg %p1595_p7 }
 0x30d   : > { %p1601_p12 = pnand %p1600_p8, %p1596_p10 }
 0x30f   : > { %1604 = shalt.err (!%p1601_p12)
}
 0x310   : > { %s1666_s7 = smov 512   ;;  %s1667_s18 = smov 32  }
 0x311   : > { %1470 = dma.vmem_to_hbm [thread:$0]  (%p1744_p9), %s2235_s9, 3072, %s2233_s27, %s1300_s8, %s1666_s7, %s1666_s7, %s1667_s18  }
 0x312 PF: > { %s1330_s10 = sand.u32 1, %s1639_s15   ;;  %p2378_p0 = scmp.ge.s32.totalorder %s1659_s20, 2 }
 0x313   : > { %s1331_s11 = scalar_lea.sflag [#allocation4], %s1330_s10 }
 0x314   : > { %p1477_p1 = pnand %p2378_p0, %p1751_p11 }
 0x316   : > { %p1478_p3 = pneg %p1477_p1 }
 0x318   : > { %1634 = dma.done.wait (%p1478_p3), %s1331_s11, 3072  }
 0x319   : > { %1636 = vsyncadd (%p1478_p3), %s1331_s11, 4294964224  ;;  %s20_s20 = sadd.s32 1, %s1659_s20   ;;  %s2379_s15 = smov %s1643_s16 }
 0x31a   : > { %p17_p5 = scmp.ge.s32.totalorder %s20_s20, 4   ;;  %s2380_s16 = smov %s1647_s17 }
 0x31b   : > { %s2381_s17 = smov %s1749_s29  ;;  %s2382_s18 = smov %s1655_s19 }
 0x31c   : > { %s2383_s19 = smov %s2385_s23  ;;  %19 = sbr.rel (!%p17_p5) target bundleno = 6 (0x6), region = 81 }
 0x321   :  { %1336 = vsyncpa [#allocation3], 1 }
 0x322   :  { %1338 = vsyncpa [#allocation3 + $0x1], 1 }
 0x323   :  { %1339 = vsyncpa [#allocation4], 1 }
 0x324   :  { %1341 = vsyncpa [#allocation4 + $0x1], 1 }

</bundles_post_ra>
